<compile_context>
chip_gen: v5e
topology: v5e:2x2
jax: 0.10.0
libtpu: 0.0.40
codegen_flags: <defaults>
</compile_context>

<pallas_src>
import functools

import jax
import jax.numpy as jnp
from jax import lax
from jax.experimental import pallas as pl
from jax.experimental.pallas import tpu as pltpu


def _self_attention_kernel(gamma_ref, x_ref, ws_ref, bs_ref, wv_ref, bv_ref,
                           o_ref, v_scr):
    # gamma_ref: (1, 1)    SMEM scalar
    # x_ref:     (1, C, L) input row (lane dim = L)
    # ws_ref:    (C, C)    folded Wq^T @ Wk, bf16
    # bs_ref:    (C, 1)    folded Wq^T @ bk, f32
    # wv_ref:    (C, C)    value weight, bf16
    # bv_ref:    (C, 1)    value bias, f32
    # o_ref:     (1, C, TJ) output column tile
    # v_scr:     (C, L)    cached value projection (bf16), persists across j
    j = pl.program_id(1)
    TJ = o_ref.shape[2]

    xb_bf = x_ref[0].astype(jnp.bfloat16)               # (C, L) MXU operand

    @pl.when(j == 0)
    def _():
        # Value projection for the whole row, once per batch element.
        v = jnp.dot(wv_ref[...], xb_bf,
                    preferred_element_type=jnp.float32) + bv_ref[...]
        v_scr[...] = v.astype(jnp.bfloat16)

    col = pl.multiple_of(j * TJ, TJ)
    xb_tile = x_ref[0, :, pl.ds(col, TJ)]                # (C, TJ) f32

    # Folded key/query projection for this column tile: (C, TJ)
    kq = jnp.dot(ws_ref[...], xb_tile.astype(jnp.bfloat16),
                 preferred_element_type=jnp.float32) + bs_ref[...]

    # Scores s[i, t] = sum_c x[c, i] * kq[c, t]  -> (L, TJ), contraction over C.
    s = lax.dot_general(xb_bf, kq.astype(jnp.bfloat16),
                        (((0,), (0,)), ((), ())),
                        preferred_element_type=jnp.float32)

    # Softmax over the query axis (axis 0) == F.softmax(query_key, dim=1);
    # the query axis is fully inside this tile, so column tiling is exact.
    m = jnp.max(s, axis=0, keepdims=True)                # (1, TJ)
    p = jnp.exp(s - m)                                   # (L, TJ) f32
    denom = jnp.sum(p, axis=0, keepdims=True)            # (1, TJ)

    # Value mix first; normalize afterwards (denom is constant per column).
    att = jnp.dot(v_scr[...], p.astype(jnp.bfloat16),
                  preferred_element_type=jnp.float32)    # (C, TJ)
    att = att * pl.reciprocal(denom, approx=True)

    o_ref[0] = gamma_ref[0, 0] * att + xb_tile


def _pick_tj(L, tj=None):
    if tj is not None:
        assert tj == L or (L % tj == 0 and tj % 128 == 0), (L, tj)
        return tj
    if L % 128 != 0:
        return L
    for cand in (512, 256, 128):
        if L % cand == 0:
            return cand
    return L


def self_attention_forward(x_nchw, params, tj=None):
    """SelfAttention forward (NCHW in / NCHW out, matching the PyTorch module)."""
    # TODO(synk): downsample/upsample path (resample_kernel > 1: MaxPool2d +
    # F.interpolate) not implemented; the default resample_kernel=1 bypasses it.
    N, C, H, W = x_nchw.shape
    L = H * W
    TJ = _pick_tj(L, tj)
    nj = L // TJ

    x = x_nchw.reshape(N, C, L).astype(jnp.float32)
    gamma = jnp.reshape(params["gamma"], (1, 1)).astype(jnp.float32)

    hp = lax.Precision.HIGHEST
    wq = params["wq"].astype(jnp.float32)                # (Cq, C)
    wk = params["wk"].astype(jnp.float32)                # (Cq, C)
    bk = params["bk"].astype(jnp.float32)                # (Cq,)
    # Fold Q and K projections.  bq is dropped: it only contributes a
    # per-key-column constant which cancels under softmax over the query axis.
    ws = jnp.dot(wq.T, wk, precision=hp).astype(jnp.bfloat16)        # (C, C)
    bs = jnp.dot(wq.T, bk, precision=hp).reshape(C, 1)               # (C, 1) f32
    wv = params["wv"].astype(jnp.bfloat16)                           # (C, C)
    bv = jnp.reshape(params["bv"], (C, 1)).astype(jnp.float32)       # (C, 1)

    out = pl.pallas_call(
        _self_attention_kernel,
        out_shape=jax.ShapeDtypeStruct((N, C, L), jnp.float32),
        grid=(N, nj),
        in_specs=[
            pl.BlockSpec(memory_space=pltpu.MemorySpace.SMEM),   # gamma
            pl.BlockSpec((1, C, L), lambda b, j: (b, 0, 0)),     # x (full row)
            pl.BlockSpec((C, C), lambda b, j: (0, 0)),           # W_s (bf16)
            pl.BlockSpec((C, 1), lambda b, j: (0, 0)),           # b_s
            pl.BlockSpec((C, C), lambda b, j: (0, 0)),           # Wv (bf16)
            pl.BlockSpec((C, 1), lambda b, j: (0, 0)),           # bv
        ],
        out_specs=pl.BlockSpec((1, C, TJ), lambda b, j: (b, 0, j)),
        scratch_shapes=[pltpu.VMEM((C, L), jnp.bfloat16)],       # cached V
        compiler_params=pltpu.CompilerParams(
            dimension_semantics=("parallel", "arbitrary")),
    )(gamma, x, ws, bs, wv, bv)
    return out.reshape(N, C, H, W)


def init_params(key, inplanes, query_planes=None):
    """Deterministic synthetic parameters; shapes match the PyTorch module.

    nn.Conv1d(cin, cout, 1) weight is (cout, cin, 1) -> stored here as (cout, cin).
    NOTE: gamma is initialized to 0 in PyTorch (output == input); a non-zero
    deterministic value is used here so the attention path is actually exercised.
    """
    qp = query_planes or inplanes // 8
    ks = jax.random.split(key, 6)
    return dict(
        wq=0.1 * jax.random.normal(ks[0], (qp, inplanes), jnp.float32),
        bq=0.1 * jax.random.normal(ks[1], (qp,), jnp.float32),
        wk=0.1 * jax.random.normal(ks[2], (qp, inplanes), jnp.float32),
        bk=0.1 * jax.random.normal(ks[3], (qp,), jnp.float32),
        wv=0.1 * jax.random.normal(ks[4], (inplanes, inplanes), jnp.float32),
        bv=0.1 * jax.random.normal(ks[5], (inplanes,), jnp.float32),
        gamma=jnp.asarray(0.75, jnp.float32),
    )


# --- pure-JAX reference (no Pallas) for verification -------------------------
def reference_forward(x_nchw, params):
    N, C, H, W = x_nchw.shape
    L = H * W
    hp = lax.Precision.HIGHEST
    x = x_nchw.reshape(N, C, L)
    q = jnp.einsum('oc,ncl->nol', params["wq"], x, precision=hp) + params["bq"][None, :, None]
    k = jnp.einsum('oc,ncl->nol', params["wk"], x, precision=hp) + params["bk"][None, :, None]
    v = jnp.einsum('oc,ncl->nol', params["wv"], x, precision=hp) + params["bv"][None, :, None]
    s = jnp.einsum('noi,noj->nij', q, k, precision=hp)          # (N, L, L)
    attn = jax.nn.softmax(s, axis=1)                            # softmax over query positions (dim=1)
    att = jnp.einsum('nci,nij->ncj', v, attn, precision=hp)     # (N, C, L)
    return params["gamma"] * att.reshape(N, C, H, W) + x_nchw


if __name__ == "__main__":
    key = jax.random.PRNGKey(0)
    kx, kp = jax.random.split(key)

    N, C, H, W = 2, 32, 16, 16          # inplanes=32 -> query_planes = 32 // 8 = 4
    x = jax.random.normal(kx, (N, C, H, W), jnp.float32)
    params = init_params(kp, C)

    fwd = jax.jit(functools.partial(self_attention_forward, tj=128))  # L=256 -> 2 column tiles
    out = jax.block_until_ready(fwd(x, params))

    ref = reference_forward(x, params)
    assert out.shape == (N, C, H, W), out.shape
    err = float(jnp.max(jnp.abs(out - ref)))
    # bf16 MXU operands (f32 accumulation) -> tolerance relaxed vs. the pure-f32 reference.
    assert jnp.allclose(out, ref, atol=5e-2, rtol=5e-2), err

    print("KERNEL_OK")
</pallas_src>

<mosaic_0001>
module attributes {stable_mosaic.version = 11 : i64} {
  func.func @_self_attention_kernel(%arg0: i32, %arg1: i32, %arg2: memref<1x1xf32, #tpu.memory_space<smem>>, %arg3: memref<1x32x256xf32, #tpu.memory_space<vmem>>, %arg4: memref<32x32xbf16, #tpu.memory_space<vmem>>, %arg5: memref<32x1xf32, #tpu.memory_space<vmem>>, %arg6: memref<32x32xbf16, #tpu.memory_space<vmem>>, %arg7: memref<32x1xf32, #tpu.memory_space<vmem>>, %arg8: memref<1x32x128xf32, #tpu.memory_space<vmem>>, %arg9: memref<32x256xbf16, #tpu.memory_space<vmem>>) attributes {dimension_semantics = [#tpu.dimension_semantics<parallel>, #tpu.dimension_semantics<arbitrary>], iteration_bounds = array<i64: 2, 2>, scalar_prefetch = 0 : i64, scratch_operands = 1 : i64, tpu.core_type = #tpu.core_type<tc>, window_params = [{transform_indices = @transform_0, window_bounds = array<i64: 1, 1>}, {transform_indices = @transform_1, window_bounds = array<i64: 1, 32, 256>}, {pipeline_mode = #tpu.pipeline_mode<synchronous>, transform_indices = @transform_2, window_bounds = array<i64: 32, 32>}, {pipeline_mode = #tpu.pipeline_mode<synchronous>, transform_indices = @transform_3, window_bounds = array<i64: 32, 1>}, {pipeline_mode = #tpu.pipeline_mode<synchronous>, transform_indices = @transform_4, window_bounds = array<i64: 32, 32>}, {pipeline_mode = #tpu.pipeline_mode<synchronous>, transform_indices = @transform_5, window_bounds = array<i64: 32, 1>}, {transform_indices = @transform_6, window_bounds = array<i64: 1, 32, 128>}]} {
    %c0 = arith.constant 0 : index
    %c0_0 = arith.constant 0 : index
    %c0_1 = arith.constant 0 : index
    %0 = vector.load %arg3[%c0, %c0_0, %c0_1] : memref<1x32x256xf32, #tpu.memory_space<vmem>>, vector<1x32x256xf32>
    %1 = vector.shape_cast %0 : vector<1x32x256xf32> to vector<32x256xf32>
    %2 = arith.truncf %1 : vector<32x256xf32> to vector<32x256xbf16>
    %c0_i32 = arith.constant 0 : i32
    %3 = arith.cmpi eq, %arg1, %c0_i32 : i32
    %4 = arith.extui %3 : i1 to i32
    %c0_i32_2 = arith.constant 0 : i32
    %5 = arith.cmpi ne, %4, %c0_i32_2 : i32
    scf.if %5 {
      %c0_20 = arith.constant 0 : index
      %c0_21 = arith.constant 0 : index
      %39 = vector.load %arg6[%c0_20, %c0_21] : memref<32x32xbf16, #tpu.memory_space<vmem>>, vector<32x32xbf16>
      %cst_22 = arith.constant dense<0.000000e+00> : vector<32x256xf32>
      %40 = tpu.matmul %39, %2, %cst_22 {dimension_numbers = #tpu.dot_dimension_numbers<[1], [0], [0], [1], [0, 0, 1, 1], [], []>} : vector<32x32xbf16>, vector<32x256xbf16>, vector<32x256xf32> -> vector<32x256xf32>
      %c0_23 = arith.constant 0 : index
      %c0_24 = arith.constant 0 : index
      %41 = vector.load %arg7[%c0_23, %c0_24] : memref<32x1xf32, #tpu.memory_space<vmem>>, vector<32x1xf32>
      %42 = vector.broadcast %41 : vector<32x1xf32> to vector<32x256xf32>
      %43 = arith.addf %40, %42 : vector<32x256xf32>
      %44 = arith.truncf %43 : vector<32x256xf32> to vector<32x256xbf16>
      %c0_25 = arith.constant 0 : index
      %c0_26 = arith.constant 0 : index
      %45 = vector.load %arg9[%c0_25, %c0_26] : memref<32x256xbf16, #tpu.memory_space<vmem>>, vector<32x256xbf16>
      tpu.vector_store %arg9[%c0_25, %c0_26], %44 {strides = array<i32>} : memref<32x256xbf16, #tpu.memory_space<vmem>>, vector<32x256xbf16>,
    } else {
    }
    %c128_i32 = arith.constant 128 : i32
    %6 = arith.muli %arg1, %c128_i32 : i32
    %7 = tpu.assume_multiple %6, 128 : i32
    %c0_3 = arith.constant 0 : index
    %c0_4 = arith.constant 0 : index
    %8 = arith.index_cast %7 : i32 to index
    %9 = vector.load %arg3[%c0_3, %c0_4, %8] : memref<1x32x256xf32, #tpu.memory_space<vmem>>, vector<1x32x128xf32>
    %10 = vector.shape_cast %9 : vector<1x32x128xf32> to vector<32x128xf32>
    %c0_5 = arith.constant 0 : index
    %c0_6 = arith.constant 0 : index
    %11 = vector.load %arg4[%c0_5, %c0_6] : memref<32x32xbf16, #tpu.memory_space<vmem>>, vector<32x32xbf16>
    %12 = arith.truncf %10 : vector<32x128xf32> to vector<32x128xbf16>
    %cst = arith.constant dense<0.000000e+00> : vector<32x128xf32>
    %13 = tpu.matmul %11, %12, %cst {dimension_numbers = #tpu.dot_dimension_numbers<[1], [0], [0], [1], [0, 0, 1, 1], [], []>} : vector<32x32xbf16>, vector<32x128xbf16>, vector<32x128xf32> -> vector<32x128xf32>
    %c0_7 = arith.constant 0 : index
    %c0_8 = arith.constant 0 : index
    %14 = vector.load %arg5[%c0_7, %c0_8] : memref<32x1xf32, #tpu.memory_space<vmem>>, vector<32x1xf32>
    %15 = vector.broadcast %14 : vector<32x1xf32> to vector<32x128xf32>
    %16 = arith.addf %13, %15 : vector<32x128xf32>
    %17 = arith.truncf %16 : vector<32x128xf32> to vector<32x128xbf16>
    %cst_9 = arith.constant dense<0.000000e+00> : vector<256x128xf32>
    %18 = tpu.matmul %2, %17, %cst_9 {dimension_numbers = #tpu.dot_dimension_numbers<[0], [0], [1], [1], [0, 1, 1, 1], [], []>} : vector<32x256xbf16>, vector<32x128xbf16>, vector<256x128xf32> -> vector<256x128xf32>
    %cst_10 = arith.constant dense<0xFF800000> : vector<128xf32>
    %19 = vector.multi_reduction <maximumf>, %18, %cst_10 [0] : vector<256x128xf32> to vector<128xf32>
    %20 = vector.shape_cast %19 : vector<128xf32> to vector<1x128xf32>
    %21 = vector.broadcast %20 : vector<1x128xf32> to vector<256x128xf32>
    %22 = arith.subf %18, %21 : vector<256x128xf32>
    %23 = math.exp %22 : vector<256x128xf32>
    %cst_11 = arith.constant dense<0.000000e+00> : vector<128xf32>
    %24 = vector.multi_reduction <add>, %23, %cst_11 [0] : vector<256x128xf32> to vector<128xf32>
    %25 = vector.shape_cast %24 : vector<128xf32> to vector<1x128xf32>
    %c0_12 = arith.constant 0 : index
    %c0_13 = arith.constant 0 : index
    %26 = vector.load %arg9[%c0_12, %c0_13] : memref<32x256xbf16, #tpu.memory_space<vmem>>, vector<32x256xbf16>
    %27 = arith.truncf %23 : vector<256x128xf32> to vector<256x128xbf16>
    %cst_14 = arith.constant dense<0.000000e+00> : vector<32x128xf32>
    %28 = tpu.matmul %26, %27, %cst_14 {dimension_numbers = #tpu.dot_dimension_numbers<[1], [0], [0], [1], [0, 0, 1, 1], [], []>} : vector<32x256xbf16>, vector<256x128xbf16>, vector<32x128xf32> -> vector<32x128xf32>
    %29 = tpu.reciprocal %25 {approx = true} : vector<1x128xf32> -> vector<1x128xf32>
    %30 = vector.broadcast %29 : vector<1x128xf32> to vector<32x128xf32>
    %31 = arith.mulf %28, %30 : vector<32x128xf32>
    %c0_15 = arith.constant 0 : index
    %c0_16 = arith.constant 0 : index
    %32 = memref.load %arg2[%c0_15, %c0_16] : memref<1x1xf32, #tpu.memory_space<smem>>
    %33 = vector.broadcast %32 : f32 to vector<32x128xf32>
    %34 = arith.mulf %33, %31 : vector<32x128xf32>
    %35 = arith.addf %34, %10 : vector<32x128xf32>
    %c0_17 = arith.constant 0 : index
    %c0_18 = arith.constant 0 : index
    %c0_19 = arith.constant 0 : index
    %36 = vector.load %arg8[%c0_17, %c0_18, %c0_19] : memref<1x32x128xf32, #tpu.memory_space<vmem>>, vector<1x32x128xf32>
    %37 = vector.shape_cast %36 : vector<1x32x128xf32> to vector<32x128xf32>
    %38 = vector.shape_cast %35 : vector<32x128xf32> to vector<1x32x128xf32>
    tpu.vector_store %arg8[%c0_17, %c0_18, %c0_19], %38 {strides = array<i32>} : memref<1x32x128xf32, #tpu.memory_space<vmem>>, vector<1x32x128xf32>,
    return
  }
  func.func @transform_0(%arg0: i32, %arg1: i32) -> (i32, i32) {
    %c0_i32 = arith.constant 0 : i32
    %c0_i32_0 = arith.constant 0 : i32
    %c0_i32_1 = arith.constant 0 : i32
    return %c0_i32, %c0_i32_0 : i32, i32
  }
  func.func @transform_1(%arg0: i32, %arg1: i32) -> (i32, i32, i32) {
    %c0_i32 = arith.constant 0 : i32
    %c0_i32_0 = arith.constant 0 : i32
    %c0_i32_1 = arith.constant 0 : i32
    return %arg0, %c0_i32, %c0_i32_0 : i32, i32, i32
  }
  func.func @transform_2(%arg0: i32, %arg1: i32) -> (i32, i32) {
    %c0_i32 = arith.constant 0 : i32
    %c0_i32_0 = arith.constant 0 : i32
    %c0_i32_1 = arith.constant 0 : i32
    return %c0_i32, %c0_i32_0 : i32, i32
  }
  func.func @transform_3(%arg0: i32, %arg1: i32) -> (i32, i32) {
    %c0_i32 = arith.constant 0 : i32
    %c0_i32_0 = arith.constant 0 : i32
    %c0_i32_1 = arith.constant 0 : i32
    return %c0_i32, %c0_i32_0 : i32, i32
  }
  func.func @transform_4(%arg0: i32, %arg1: i32) -> (i32, i32) {
    %c0_i32 = arith.constant 0 : i32
    %c0_i32_0 = arith.constant 0 : i32
    %c0_i32_1 = arith.constant 0 : i32
    return %c0_i32, %c0_i32_0 : i32, i32
  }
  func.func @transform_5(%arg0: i32, %arg1: i32) -> (i32, i32) {
    %c0_i32 = arith.constant 0 : i32
    %c0_i32_0 = arith.constant 0 : i32
    %c0_i32_1 = arith.constant 0 : i32
    return %c0_i32, %c0_i32_0 : i32, i32
  }
  func.func @transform_6(%arg0: i32, %arg1: i32) -> (i32, i32, i32) {
    %c0_i32 = arith.constant 0 : i32
    %c0_i32_0 = arith.constant 0 : i32
    return %arg0, %c0_i32, %arg1 : i32, i32, i32
  }
}

</mosaic_0001>

<bundles_post_ra>
// kernel: self_attention_forward.1
= control target key start
LH: loop header
LB: loop body
LE: loop exit
PB: predicated region body
PF: predicated region fallthrough
CT: control target
= control target key end

     0   :  { %s1737_s0 = inlined_call_operand.<no memory space> [shape: f32[1,1], index: 0, kind: input, shape index: {}]   ;;  %s1738_s1 = inlined_call_operand.vmem [shape: f32[2,32,256], index: 1, kind: input, shape index: {}]   ;;  %s1739_s2 = inlined_call_operand.vmem [shape: bf16[32,32], index: 2, kind: input, shape index: {}]   ;;  %s1740_s3 = inlined_call_operand.vmem [shape: f32[32,1], index: 3, kind: input, shape index: {}]   ;;  %s1741_s4 = inlined_call_operand.vmem [shape: bf16[32,32], index: 4, kind: input, shape index: {}]   ;;  %s1742_s5 = inlined_call_operand.vmem [shape: f32[32,1], index: 5, kind: input, shape index: {}]   ;;  %s1743_s6 = inlined_call_operand.vmem [shape: f32[2,32,256], index: 6, kind: output, shape index: {}]  }
   0x1   :  { %11 = sst [smem:[#allocation3]] %s1737_s0 }
   0x2   :  { %s1307_s23 = smov 0   ;;  %s1309_s24 = smov 0  }
   0x3   :  { %s1311_s25 = smov 0   ;;  %s1313_s26 = smov 0  }
   0x4   :  { %s1315_s27 = smov 0   ;;  %s1317_s28 = smov 0  }
   0x5   :  { %s1319_s29 = smov 0  }
   0x6 LB: > { %s26_s0 = sadd.s32 1, %s1257_s27  ;;  %s29_s30 = sadd.s32 1, %s1261_s28  ;;  %s1265_s29 = sphi %s1319_s29, %s17_s29   ;;  %s1261_s28 = sphi %s1317_s28, %s1750_s28   ;;  %s1257_s27 = sphi %s1315_s27, %s1749_s27   ;;  %s1253_s26 = sphi %s1313_s26, %s1748_s26   ;;  %s1249_s25 = sphi %s1311_s25, %s1747_s25   ;;  %s1245_s24 = sphi %s1309_s24, %s1746_s24   ;;  %s1241_s23 = sphi %s1307_s23, %s1745_s23  }
   0x7   : > { %p27_p0 = scmp.ge.s32.totalorder %s26_s0, 2  ;;  %s996_s7 = sadd.s32 4294967295, %s1265_s29  }
   0x8   : > { %p179_p1 = scmp.ne.s32.totalorder %s1245_s24, %s1241_s23  ;;  %p180_p2 = scmp.eq.s32.totalorder %s996_s7, 3 }
   0x9   : > { %s1752_s0 = smov (%p27_p0, %s26_s0), 0  ;;  %s1754_s30 = smov (!%p27_p0, %s29_s30), %s1261_s28 }
   0xa   : > { %s165_s8 = ssub.s32 %s1257_s27, %s1752_s0  ;;  %p31_p3 = scmp.ge.s32.totalorder %s1754_s30, 2 }
   0xb   : > { %p1000_p4 = scmp.ge.s32.totalorder %s1265_s29, 1  ;;  %p1353_p5 = por %p180_p2, %p179_p1 }
   0xc   : > { %p227_p6 = scmp.lt.s32.totalorder %s1265_s29, 5  ;;  %s1756_s30 = smov (%p31_p3, %s1754_s30), 0 }
   0xd   : > { %s164_s10 = ssub.s32 %s1261_s28, %s1756_s30  ;;  %s169_s12 = sadd.s32 1, %s1245_s24 }
   0xe   : > { %p228_p7 = pnand %p1000_p4, %p227_p6  ;;  %s166_s11 = sor.u32 %s165_s8, %s164_s10 }
   0xf   : > { %p167_p8 = scmp.eq.s32.totalorder %s166_s11, 0  ;;  %s253_s14 = sand.u32 (!%p228_p7), 1, %s1241_s23  }
  0x10   : > { %231 = sbr.rel (%p228_p7) target bundleno = 901 (0x385), region = 44  ;;  %p256_p9 = scmp.lt.s32.totalorder (!%p228_p7), %s1253_s26, 1 }
  0x11   : > { %s1364_s13 = scalar_select %p167_p8, %s1245_s24, %s169_s12  }
  0x12   : > { %s1001_s15 = sshll.u32 (!%p228_p7), %s253_s14, 5  ;;  %p1004_p10 = scmp.ne.s32.totalorder (!%p228_p7), %s1249_s25, 0 }
  0x13   : > { %s1388_s21 = scalar_lea.vmem (!%p228_p7), [#allocation4], %s1001_s15 }
  0x15   : > { %s257_s16 = scalar_select %p256_p9, %s1253_s26, 1 }
  0x17   : > { %s1066_s17 = sshll.u32 %s257_s16, 6 }
  0x18   : > { %s1372_s20 = scalar_lea.vmem %s1738_s1, %s1066_s17  ;;  %277 = sbr.rel (%p1004_p10) target bundleno = 183 (0xb7), region = 48 }
  0x19   : > { %v262_v0 = vld [vmem:[%s1372_s20] sm:$0xff]  ;;  %v263_v1 = vld [vmem:[%s1372_s20 + $0x8] sm:$0xff]  ;;  %v264_v2 = vld [vmem:[%s1372_s20 + $0x10] sm:$0xff] }
  0x1a   : > { %v265_v3 = vld [vmem:[%s1372_s20 + $0x18] sm:$0xff]  ;;  %v266_v4 = vld [vmem:[%s1372_s20 + $0x20] sm:$0xff]  ;;  %v267_v5 = vld [vmem:[%s1372_s20 + $0x28] sm:$0xff]  ;;  %v1380_v6 = vpack.c.bf16 %v264_v2, %v262_v0 }
  0x1b   : > { %v268_v7 = vld [vmem:[%s1372_s20 + $0x30] sm:$0xff]  ;;  %v269_v8 = vld [vmem:[%s1372_s20 + $0x38] sm:$0xff]  ;;  %v271_v9 = vpack.c.bf16 %v265_v3, %v263_v1 }
  0x1c   : > { %v1384_v10 = vpack.c.bf16 %v268_v7, %v266_v4  ;;  %v1386_v11 = vpack.c.bf16 %v269_v8, %v267_v5 }
  0x1d   : > { %v284_v12 = vld [vmem:[%s1742_s5 + $0x10] sm:$0xff]  ;;  %v282_v13 = vld [vmem:[%s1742_s5] sm:$0xff]  ;;  %v1267_v14 = vmov 0   ;;  %v1068_v16 = vld [vmem:[%s1741_s4 + $0x8] sm:$0xff]  ;;  %vm316_vm0 = vcmask 261120  }
  0x1e   : > { %329 = vmatpush.bf16.msra.mxu0 %v1384_v10  ;;  %1075 = vmatpush.bf16.msra.mxu2 %v1384_v10  ;;  %v1067_v15 = vld [vmem:[%s1741_s4] sm:$0xff]  ;;  %v285_v17 = vld [vmem:[%s1742_s5 + $0x18] sm:$0xff]  ;;  %v283_v18 = vld [vmem:[%s1742_s5 + $0x8] sm:$0xff] }
  0x1f   : > { %348 = vmatpush.bf16.msra.mxu1 %v1386_v11  ;;  %1077 = vmatpush.bf16.msra.mxu3 %v1386_v11 }
  0x20   : > { %1142 = vset.pattern.permute.xlu1 %v1267_v14  ;;  %1141 = vset.pattern.permute.xlu0 %v1267_v14 }
  0x21   : > { %298 = vperm.xlu1 %1142, %v284_v12   ;;  %288 = vperm.xlu0 %1141, %v282_v13  }
  0x22   : > { %330 = vmatpush.bf16.msra.mxu0 %v1380_v6  ;;  %1076 = vmatpush.bf16.msra.mxu2 %v1380_v6 }
  0x23   : > { %349 = vmatpush.bf16.msra.mxu1 %v271_v9  ;;  %1078 = vmatpush.bf16.msra.mxu3 %v271_v9 }
  0x25   : > { %1013 = vmatmul.msk.bf16.vlgmr.msra.gmra.mxu0 %vm316_vm0, %v1067_v15  ;;  %1014 = vmatmul.msk.bf16.vlgmr.msra.gmra.mxu2 %vm316_vm0, %v1068_v16 }
  0x26   : > { %1015 = vmatmul.msk.bf16.vlgmr.msra.gmra.mxu1 %vm316_vm0, %v1067_v15  ;;  %1016 = vmatmul.msk.bf16.vlgmr.msra.gmra.mxu3 %vm316_vm0, %v1068_v16 }
  0x29   : > { %303 = vperm.xlu1 %1142, %v285_v17   ;;  %293 = vperm.xlu0 %1141, %v283_v18  }
  0x93   : > { %v289_v19 = vpop.permute.xlu0 %288  ;;  %v299_v24 = vpop.permute.xlu1 %298 }
  0x9b   : > { %v294_v29 = vpop.permute.xlu0 %293  ;;  %v304_v37 = vpop.permute.xlu1 %303 }
  0xa2   : > { %v332_v20 = vpop.f32.mrf.mxu0 }
  0xa3   : > { %v333_v21 = vadd.f32 %v332_v20, %v289_v19  ;;  %v351_v22 = vpop.f32.mrf.mxu1 }
  0xa4   : > { %v352_v23 = vadd.f32 %v351_v22, %v289_v19 }
  0xa6   : > { %v361_v25 = vpack.c.bf16 %v352_v23, %v333_v21 }
  0xa8   : > { %365 = vst [vmem:[#allocation2] sm:$0xff] %v361_v25  ;;  %v337_v26 = vpop.f32.mrf.mxu2 }
  0xa9   : > { %v338_v27 = vadd.f32 %v337_v26, %v299_v24  ;;  %v356_v28 = vpop.f32.mrf.mxu3 }
  0xaa   : > { %v357_v30 = vadd.f32 %v356_v28, %v299_v24  ;;  %v334_v31 = vpop.f32.mrf.mxu0 }
  0xab   : > { %v335_v32 = vadd.f32 %v334_v31, %v294_v29  ;;  %v353_v33 = vpop.f32.mrf.mxu1 }
  0xac   : > { %v363_v34 = vpack.c.bf16 %v357_v30, %v338_v27  ;;  %v354_v35 = vadd.f32 %v353_v33, %v294_v29 }
  0xae   : > { %367 = vst [vmem:[#allocation2 + $0x10] sm:$0xff] %v363_v34  ;;  %v362_v36 = vpack.c.bf16 %v354_v35, %v335_v32 }
  0xb0   : > { %366 = vst [vmem:[#allocation2 + $0x8] sm:$0xff] %v362_v36  ;;  %v339_v38 = vpop.f32.mrf.mxu2 }
  0xb1   : > { %v340_v39 = vadd.f32 %v339_v38, %v304_v37  ;;  %v358_v40 = vpop.f32.mrf.mxu3 }
  0xb2   : > { %v359_v41 = vadd.f32 %v358_v40, %v304_v37 }
  0xb4   : > { %v364_v42 = vpack.c.bf16 %v359_v41, %v340_v39 }
  0xb6   : > { %368 = vst [vmem:[#allocation2 + $0x18] sm:$0xff] %v364_v42 }
  0xb7 PF: > { %446 = vxpose.binary.xlu2.c.b16.start [1/4] (short) %v271_v9, %v1380_v6, 128  ;;  %s1017_s19 = sshll.u32 %s1249_s25, 7  ;;  %v386_v43 = vld [vmem:[%s1740_s3 + $0x10] sm:$0xff]  ;;  %v1268_v44 = vmov 0   ;;  %v384_v45 = vld [vmem:[%s1740_s3] sm:$0xff]  ;;  %v387_v52 = vld [vmem:[%s1740_s3 + $0x18] sm:$0xff]  ;;  %vm418_vm1 = vcmask 261120  }
  0xb8   : > { %s370_s7 = sshra.s32 %s1017_s19, 7  ;;  %1143 = vset.pattern.permute.xlu0 %v1268_v44  ;;  %1144 = vset.pattern.permute.xlu1 %v1268_v44  ;;  %v385_v53 = vld [vmem:[%s1740_s3 + $0x8] sm:$0xff]  ;;  %v1069_v54 = vld [vmem:[%s1739_s2] sm:$0xff]  ;;  %s860_s23 = sld [smem:[#allocation3]] }
  0xb9   : > { %s1018_s11 = sshll.u32 %s370_s7, 3  ;;  %400 = vperm.xlu0 %1143, %v386_v43   ;;  %390 = vperm.xlu1 %1144, %v384_v45   ;;  %v1070_v55 = vld [vmem:[%s1739_s2 + $0x8] sm:$0xff]  ;;  %s1062_s7 = sshll.u32 (%p1353_p5), %s1253_s26, 3 }
  0xba   : > { %s373_s12 = scalar_lea.vmem %s1372_s20, %s1018_s11  ;;  %s882_s8 = sadd.s32 (%p1353_p5), %s1249_s25, %s1062_s7 }
  0xbb   : > { %v1424_v46 = vld [vmem:[%s373_s12 + $0x20] sm:$0xff]  ;;  %v1426_v47 = vld [vmem:[%s373_s12 + $0x30] sm:$0xff]  ;;  %s1063_s10 = sshll.u32 (%p1353_p5), %s882_s8, 3 }
  0xbc   : > { %v1428_v48 = vld [vmem:[%s373_s12] sm:$0xff]  ;;  %v383_v49 = vpack.c.bf16 %v1426_v47, %v1424_v46  ;;  %v1432_v50 = vld [vmem:[%s373_s12 + $0x10] sm:$0xff]  ;;  %s884_s14 = scalar_lea.vmem (%p1353_p5), %s1743_s6, %s1063_s10 }
  0xbd   : > { %v382_v51 = vpack.c.bf16 %v1432_v50, %v1428_v48 }
  0xbe   : > { %431 = vmatpush.bf16.msra.mxu0 %v383_v49 }
  0xc1   : > { %405 = vperm.xlu0 %1143, %v387_v52   ;;  %395 = vperm.xlu1 %1144, %v385_v53  }
  0xc2   : > { %432 = vmatpush.bf16.msra.mxu0 %v382_v51 }
  0xc5   : > { %1027 = vmatmul.msk.bf16.vlgmr.msra.gmra.mxu0 %vm418_vm1, %v1069_v54 }
  0xc7   : > { %447 = vxpose.binary.xlu2.c.b16.end [2/4] (short) %v1386_v11, %v1384_v10, 128 }
  0xd5   : > { %1028 = vmatmul.msk.bf16.gmra.mxu0 %vm418_vm1, %v1070_v55 }
 0x12b   : > { %v401_v58 = vpop.permute.xlu0 %400  ;;  %v391_v59 = vpop.permute.xlu1 %390 }
 0x133   : > { %v406_v61 = vpop.permute.xlu0 %405  ;;  %v396_v63 = vpop.permute.xlu1 %395 }
 0x142   : > { %v434_v56 = vpop.f32.mrf.mxu0 }
 0x143   : > { %v435_v2 = vadd.f32 %v434_v56, %v391_v59 }
 0x14a   : > { %v436_v57 = vpop.f32.mrf.mxu0 }
 0x14b   : > { %v437_v4 = vadd.f32 %v436_v57, %v396_v63 }
 0x14d   : > { %v444_v6 = vpack.c.bf16 %v437_v4, %v435_v2 }
 0x152   : > { %v439_v60 = vpop.f32.mrf.mxu0 }
 0x153   : > { %v440_v0 = vadd.f32 %v439_v60, %v401_v58 }
 0x158   : > { %v454_v62 = vpop.trf.xlu2 }
 0x15a   : > { %v441_v1 = vpop.f32.mrf.mxu0 }
 0x15b   : > { %v442_v3 = vadd.f32 %v441_v1, %v406_v61 }
 0x15d   : > { %v445_v5 = vpack.c.bf16 %v442_v3, %v440_v0 }
 0x15f   : > { %524 = vmatpush.bf16.msrb.mxu0 %v445_v5  ;;  %1079 = vmatpush.bf16.msra.mxu1 %v445_v5 }
 0x160   : > { %v455_v7 = vpop.trf.xlu2  ;;  %1080 = vmatpush.bf16.msra.mxu2 %v445_v5 }
 0x163   : > { %525 = vmatpush.bf16.msrb.mxu0 %v444_v6  ;;  %1081 = vmatpush.bf16.msra.mxu1 %v444_v6 }
 0x164   : > { %1082 = vmatpush.bf16.msra.mxu2 %v444_v6 }
 0x166   : > { %1029 = vmatmul.msk.bf16.vlgmr.msrb.gmra.mxu0 %vm418_vm1, %v454_v62 }
 0x168   : > { %v456_v8 = vpop.trf.xlu2 }
 0x170   : > { %v457_v9 = vpop.trf.xlu2 }
 0x176   : > { %1030 = vmatmul.msk.bf16.gmra.mxu0 %vm418_vm1, %v456_v8 }
 0x178   : > { %v458_v10 = vpop.trf.xlu2 }
 0x180   : > { %v459_v11 = vpop.trf.xlu2 }
 0x186   : > { %1031 = vmatmul.msk.bf16.gmra.mxu0 %vm418_vm1, %v458_v10 }
 0x188   : > { %v460_v12 = vpop.trf.xlu2 }
 0x190   : > { %v461_v13 = vpop.trf.xlu2 }
 0x191   : > { %1040 = vmatmul.msk.bf16.vlgmr.msra.gmra.mxu2 %vm418_vm1, %v461_v13 }
 0x196   : > { %1032 = vmatmul.msk.bf16.gmra.mxu0 %vm418_vm1, %v460_v12 }
 0x198   : > { %v462_v14 = vpop.trf.xlu2 }
 0x199   : > { %1033 = vmatmul.msk.bf16.vlgmr.msra.gmra.mxu1 %vm418_vm1, %v462_v14 }
 0x1a0   : > { %v463_v15 = vpop.trf.xlu2 }
 0x1a1   : > { %1041 = vmatmul.msk.bf16.gmra.mxu2 %vm418_vm1, %v463_v15 }
 0x1a8   : > { %v464_v16 = vpop.trf.xlu2 }
 0x1a9   : > { %1034 = vmatmul.msk.bf16.gmra.mxu1 %vm418_vm1, %v464_v16 }
 0x1b0   : > { %v465_v17 = vpop.trf.xlu2 }
 0x1b1   : > { %1042 = vmatmul.msk.bf16.gmra.mxu2 %vm418_vm1, %v465_v17 }
 0x1b8   : > { %v466_v18 = vpop.trf.xlu2 }
 0x1b9   : > { %1035 = vmatmul.msk.bf16.gmra.mxu1 %vm418_vm1, %v466_v18 }
 0x1c0   : > { %v467_v19 = vpop.trf.xlu2 }
 0x1c1   : > { %1043 = vmatmul.msk.bf16.gmra.mxu2 %vm418_vm1, %v467_v19 }
 0x1c8   : > { %v468_v20 = vpop.trf.xlu2 }
 0x1c9   : > { %1036 = vmatmul.msk.bf16.gmra.mxu1 %vm418_vm1, %v468_v20 }
 0x1d0   : > { %v469_v21 = vpop.trf.xlu2 }
 0x1d1   : > { %1044 = vmatmul.msk.bf16.gmra.mxu2 %vm418_vm1, %v469_v21 }
 0x1d9   : > { %1037 = vmatmul.msk.bf16.gmra.mxu1 %vm418_vm1, %v455_v7 }
 0x1e3   : > { %v1472_v24 = vpop.f32.mrf.mxu0 }
 0x1e9   : > { %1038 = vmatmul.msk.bf16.gmra.mxu1 %vm418_vm1, %v457_v9 }
 0x1eb   : > { %v1480_v28 = vpop.f32.mrf.mxu0 }
 0x1f3   : > { %v1486_v31 = vpop.f32.mrf.mxu0 }
 0x1f9   : > { %1039 = vmatmul.msk.bf16.gmra.mxu1 %vm418_vm1, %v459_v11 }
 0x1fb   : > { %v1492_v34 = vpop.f32.mrf.mxu0 }
 0x203   : > { %v1498_v37 = vpop.f32.mrf.mxu0 }
 0x204   : > { %v607_v57 = vmax.f32 %v1472_v24, %v1498_v37 }
 0x20b   : > { %v1506_v41 = vpop.f32.mrf.mxu0 }
 0x20c   : > { %v608_v1 = vmax.f32 %v1480_v28, %v1506_v41 }
 0x213   : > { %v1512_v44 = vpop.f32.mrf.mxu0 }
 0x214   : > { %v1474_v25 = vpop.f32.mrf.mxu2  ;;  %v609_v55 = vmax.f32 %v1486_v31, %v1512_v44 }
 0x216   : > { %v1468_v22 = vpop.f32.mrf.mxu1 }
 0x217   : > { %v611_v61 = vmax.f32 %v607_v57, %v1468_v22 }
 0x21b   : > { %v1518_v51 = vpop.f32.mrf.mxu0 }
 0x21c   : > { %v1482_v29 = vpop.f32.mrf.mxu2  ;;  %v610_v54 = vmax.f32 %v1492_v34, %v1518_v51 }
 0x21e   : > { %v1470_v23 = vpop.f32.mrf.mxu1 }
 0x21f   : > { %v612_v4 = vmax.f32 %v608_v1, %v1470_v23 }
 0x224   : > { %v1488_v32 = vpop.f32.mrf.mxu2 }
 0x226   : > { %v1476_v26 = vpop.f32.mrf.mxu1 }
 0x227   : > { %v613_v58 = vmax.f32 %v609_v55, %v1476_v26 }
 0x22c   : > { %v1494_v35 = vpop.f32.mrf.mxu2 }
 0x22e   : > { %v1478_v27 = vpop.f32.mrf.mxu1 }
 0x22f   : > { %v614_v56 = vmax.f32 %v610_v54, %v1478_v27 }
 0x234   : > { %v1500_v38 = vpop.f32.mrf.mxu2 }
 0x236   : > { %v1484_v30 = vpop.f32.mrf.mxu1 }
 0x237   : > { %v615_v2 = vmax.f32 %v611_v61, %v1484_v30 }
 0x23c   : > { %v1508_v42 = vpop.f32.mrf.mxu2 }
 0x23e   : > { %v1490_v33 = vpop.f32.mrf.mxu1 }
 0x23f   : > { %v616_v7 = vmax.f32 %v612_v4, %v1490_v33 }
 0x244   : > { %v1514_v45 = vpop.f32.mrf.mxu2 }
 0x246   : > { %v1496_v36 = vpop.f32.mrf.mxu1 }
 0x247   : > { %v617_v62 = vmax.f32 %v613_v58, %v1496_v36 }
 0x24c   : > { %v1520_v52 = vpop.f32.mrf.mxu2 }
 0x24e   : > { %v1502_v39 = vpop.f32.mrf.mxu1 }
 0x24f   : > { %v618_v59 = vmax.f32 %v614_v56, %v1502_v39 }
 0x254   : > { %v1533_v60 = vpop.f32.mrf.mxu2 }
 0x256   : > { %v1504_v40 = vpop.f32.mrf.mxu1 }
 0x257   : > { %v619_v5 = vmax.f32 %v615_v2, %v1504_v40 }
 0x25c   : > { %v1552_v12 = vpop.f32.mrf.mxu2 }
 0x25e   : > { %v1510_v43 = vpop.f32.mrf.mxu1 }
 0x25f   : > { %v620_v10 = vmax.f32 %v616_v7, %v1510_v43 }
 0x266   : > { %v1516_v49 = vpop.f32.mrf.mxu1 }
 0x267   : > { %v621_v3 = vmax.f32 %v617_v62, %v1516_v49 }
 0x269   : > { %v625_v8 = vmax.f32 %v621_v3, %v1474_v25 }
 0x26b   : > { %v629_v14 = vmax.f32 %v625_v8, %v1500_v38 }
 0x26d   : > { %v633_v19 = vmax.f32 %v629_v14, %v1533_v60 }
 0x26e   : > { %v1522_v53 = vpop.f32.mrf.mxu1 }
 0x26f   : > { %v622_v63 = vmax.f32 %v618_v59, %v1522_v53 }
 0x271   : > { %v626_v6 = vmax.f32 %v622_v63, %v1482_v29 }
 0x273   : > { %v630_v11 = vmax.f32 %v626_v6, %v1508_v42 }
 0x275   : > { %v634_v17 = vmax.f32 %v630_v11, %v1552_v12 }
 0x276   : > { %v1538_v0 = vpop.f32.mrf.mxu1 }
 0x277   : > { %v623_v9 = vmax.f32 %v619_v5, %v1538_v0  ;;  %v636_v54 = vmax.f32 %v633_v19, %v634_v17 }
 0x279   : > { %v627_v15 = vmax.f32 %v623_v9, %v1488_v32 }
 0x27b   : > { %v631_v20 = vmax.f32 %v627_v15, %v1514_v45 }
 0x27e   : > { %v1554_v13 = vpop.f32.mrf.mxu1 }
 0x27f   : > { %v624_v16 = vmax.f32 %v620_v10, %v1554_v13 }
 0x281   : > { %v628_v18 = vmax.f32 %v624_v16, %v1494_v35 }
 0x283   : > { %v632_v21 = vmax.f32 %v628_v18, %v1520_v52 }
 0x285   : > { %v635_v55 = vmax.f32 %v631_v20, %v632_v21 }
 0x287   : > { %v637_v56 = vmax.f32 %v635_v55, %v636_v54 }
 0x289   : > { %v638_v57 = vrot.slane %v637_v56, 4 }
 0x28b   : > { %v639_v58 = vmax.f32 %v637_v56, %v638_v57 }
 0x28d   : > { %v640_v59 = vrot.slane %v639_v58, 2 }
 0x28f   : > { %v641_v61 = vmax.f32 %v639_v58, %v640_v59 }
 0x291   : > { %v642_v62 = vrot.slane %v641_v61, 1 }
 0x293   : > { %v1564_v63 = vmax.f32 %v641_v61, %v642_v62 }
 0x295   : > { %v644_v1 = vsub.f32 %v1472_v24, %v1564_v63  ;;  %v645_v2 = vsub.f32 %v1480_v28, %v1564_v63  ;;  %v646_v3 = vsub.f32 %v1486_v31, %v1564_v63  ;;  %v647_v4 = vsub.f32 %v1492_v34, %v1564_v63 }
 0x296   : > { %v648_v7 = vsub.f32 %v1498_v37, %v1564_v63  ;;  %v649_v9 = vsub.f32 %v1506_v41, %v1564_v63  ;;  %v650_v24 = vsub.f32 %v1512_v44, %v1564_v63  ;;  %v651_v31 = vsub.f32 %v1518_v51, %v1564_v63 }
 0x297   : > { %v676_v5 = vmul.f32 1.442695, %v644_v1  ;;  %v678_v6 = vmul.f32 1.442695, %v645_v2  ;;  %v680_v8 = vmul.f32 1.442695, %v646_v3  ;;  %v652_v34 = vsub.f32 %v1468_v22, %v1564_v63 }
 0x298   : > { %v682_v28 = vmul.f32 1.442695, %v647_v4  ;;  %v684_v10 = vmul.f32 1.442695, %v648_v7  ;;  %v653_v37 = vsub.f32 %v1470_v23, %v1564_v63  ;;  %v686_v11 = vmul.f32 1.442695, %v649_v9 }
 0x299   : > { %1145 = vpow2.f32 %v676_v5  ;;  %v654_v41 = vsub.f32 %v1476_v26, %v1564_v63  ;;  %v688_v14 = vmul.f32 1.442695, %v650_v24  ;;  %v658_v15 = vsub.f32 %v1496_v36, %v1564_v63 }
 0x29a   : > { %1147 = vpow2.f32 %v678_v6  ;;  %v690_v51 = vmul.f32 1.442695, %v651_v31  ;;  %v659_v22 = vsub.f32 %v1502_v39, %v1564_v63  ;;  %v692_v17 = vmul.f32 1.442695, %v652_v34 }
 0x29b   : > { %1149 = vpow2.f32 %v680_v8  ;;  %v656_v23 = vsub.f32 %v1484_v30, %v1564_v63  ;;  %v694_v26 = vmul.f32 1.442695, %v653_v37  ;;  %v657_v36 = vsub.f32 %v1490_v33, %v1564_v63 }
 0x29c   : > { %1151 = vpow2.f32 %v682_v28  ;;  %v696_v20 = vmul.f32 1.442695, %v654_v41  ;;  %v662_v39 = vsub.f32 %v1516_v49, %v1564_v63  ;;  %v704_v21 = vmul.f32 1.442695, %v658_v15 }
 0x29d   : > { %1153 = vpow2.f32 %v684_v10  ;;  %v663_v55 = vsub.f32 %v1522_v53, %v1564_v63  ;;  %v706_v56 = vmul.f32 1.442695, %v659_v22  ;;  %v700_v57 = vmul.f32 1.442695, %v656_v23 }
 0x29e   : > { %1155 = vpow2.f32 %v686_v11  ;;  %v655_v49 = vsub.f32 %v1478_v27, %v1564_v63  ;;  %v702_v59 = vmul.f32 1.442695, %v657_v36  ;;  %v712_v62 = vmul.f32 1.442695, %v662_v39 }
 0x29f   : > { %v1588_v44 = vpop.eup %1145  ;;  %1157 = vpow2.f32 %v688_v14  ;;  %v714_v2 = vmul.f32 1.442695, %v663_v55  ;;  %v660_v24 = vsub.f32 %v1504_v40, %v1564_v63  ;;  %v661_v34 = vsub.f32 %v1510_v43, %v1564_v63 }
 0x2a0   : > { %v1592_v16 = vpop.eup %1147  ;;  %1159 = vpow2.f32 %v690_v51  ;;  %v698_v27 = vmul.f32 1.442695, %v655_v49  ;;  %v674_v37 = vsub.f32 %v1533_v60, %v1564_v63  ;;  %v675_v15 = vsub.f32 %v1552_v12, %v1564_v63 }
 0x2a1   : > { %v740_v18 = vadd.f32 %v1592_v16, %v1588_v44  ;;  %v1600_v19 = vpop.eup %1149  ;;  %1161 = vpow2.f32 %v692_v17  ;;  %v672_v40 = vsub.f32 %v1514_v45, %v1564_v63  ;;  %v708_v22 = vmul.f32 1.442695, %v660_v24 }
 0x2a2   : > { %v1607_v30 = vpop.eup %1151  ;;  %1163 = vpow2.f32 %v694_v26  ;;  %v673_v60 = vsub.f32 %v1520_v52, %v1564_v63  ;;  %v710_v23 = vmul.f32 1.442695, %v661_v34  ;;  %v736_v26 = vmul.f32 1.442695, %v674_v37 }
 0x2a3   : > { %v741_v54 = vadd.f32 %v1600_v19, %v740_v18  ;;  %v1612_v58 = vpop.eup %1153  ;;  %1165 = vpow2.f32 %v696_v20  ;;  %v738_v39 = vmul.f32 1.442695, %v675_v15  ;;  %v670_v45 = vsub.f32 %v1500_v38, %v1564_v63 }
 0x2a4   : > { %v1616_v61 = vpop.eup %1155  ;;  %1167 = vpow2.f32 %v704_v21  ;;  %v732_v21 = vmul.f32 1.442695, %v672_v40  ;;  %v671_v55 = vsub.f32 %v1508_v42, %v1564_v63  ;;  %v734_v52 = vmul.f32 1.442695, %v673_v60 }
 0x2a5   : > { %v742_v33 = vadd.f32 %v1607_v30, %v741_v54  ;;  %v1619_v53 = vpop.eup %1157  ;;  %1169 = vpow2.f32 %v706_v56  ;;  %v664_v56 = vsub.f32 %v1538_v0, %v1564_v63  ;;  %v665_v49 = vsub.f32 %v1554_v13, %v1564_v63 }
 0x2a6   : > { %v1621_v3 = vpop.eup %1159  ;;  %1171 = vpow2.f32 %v700_v57  ;;  %v668_v38 = vsub.f32 %v1488_v32, %v1564_v63  ;;  %v669_v42 = vsub.f32 %v1494_v35, %v1564_v63  ;;  %v666_v32 = vsub.f32 %v1474_v25, %v1564_v63 }
 0x2a7   : > { %v743_v1 = vadd.f32 %v1612_v58, %v742_v33  ;;  %v1624_v5 = vpop.eup %1161  ;;  %1173 = vpow2.f32 %v702_v59  ;;  %v728_v59 = vmul.f32 1.442695, %v670_v45  ;;  %v783_v15 = vpack.c.bf16 %v1616_v61, %v1612_v58  ;;  %v1047_v58 = vld [vmem:[#allocation2] sm:$0xf] }
 0x2a8   : > { %v1626_v6 = vpop.eup %1163  ;;  %1175 = vpow2.f32 %v712_v62  ;;  %v724_v24 = vmul.f32 1.442695, %v668_v38  ;;  %v726_v34 = vmul.f32 1.442695, %v669_v42  ;;  %v1074_v42 = vld [vmem:[#allocation2 + $0x14] sm:$0xf0] }
 0x2a9   : > { %v744_v4 = vadd.f32 %v1616_v61, %v743_v1  ;;  %v1166_v8 = vpop.eup %1165  ;;  %1177 = vpow2.f32 %v714_v2  ;;  %v730_v1 = vmul.f32 1.442695, %v671_v55  ;;  %v716_v2 = vmul.f32 1.442695, %v664_v56  ;;  %v1072_v61 = vld [vmem:[#allocation2 + $0x4] sm:$0xf0] }
 0x2aa   : > { %v1168_v9 = vpop.eup %1167  ;;  %1179 = vpow2.f32 %v698_v27  ;;  %v785_v13 = vpack.c.bf16 %v1626_v6, %v1624_v5  ;;  %v1048_v55 = vor.u32 %v1072_v61, %v1047_v58 }
 0x2ab   : > { %v745_v7 = vadd.f32 %v1619_v53, %v744_v4  ;;  %v1170_v31 = vpop.eup %1169  ;;  %1181 = vpow2.f32 %v708_v22 }
 0x2ac   : > { %v1172_v10 = vpop.eup %1171  ;;  %v788_v41 = vpack.c.bf16 %v1170_v31, %v1168_v9  ;;  %1183 = vpow2.f32 %v710_v23 }
 0x2ad   : > { %v746_v28 = vadd.f32 %v1621_v3, %v745_v7  ;;  %v1174_v14 = vpop.eup %1173  ;;  %1185 = vpow2.f32 %v736_v26  ;;  %v718_v7 = vmul.f32 1.442695, %v665_v49  ;;  %v782_v26 = vpack.c.bf16 %v1607_v30, %v1600_v19 }
 0x2ae   : > { %v1639_v51 = vpop.eup %1175  ;;  %817 = vmatpush.bf16.msrb.mxu2 %v788_v41  ;;  %v787_v36 = vpack.c.bf16 %v1174_v14, %v1172_v10  ;;  %1187 = vpow2.f32 %v738_v39 }
 0x2af   : > { %v747_v11 = vadd.f32 %v1624_v5, %v746_v28  ;;  %v1644_v17 = vpop.eup %1177  ;;  %1189 = vpow2.f32 %v732_v21  ;;  %v781_v21 = vpack.c.bf16 %v1592_v16, %v1588_v44  ;;  %v1049_v44 = vld [vmem:[#allocation2 + $0x8] sm:$0xf0]  ;;  %v1055_v16 = vld [vmem:[#allocation2 + $0x10] sm:$0xf] }
 0x2b0   : > { %v790_v12 = vpack.c.bf16 %v1644_v17, %v1639_v51  ;;  %v1180_v20 = vpop.eup %1179  ;;  %1191 = vpow2.f32 %v734_v52 }
 0x2b1   : > { %v748_v43 = vadd.f32 %v1626_v6, %v747_v11  ;;  %v786_v33 = vpack.c.bf16 %v1180_v20, %v1166_v8  ;;  %v1662_v0 = vpop.eup %1181  ;;  %1193 = vpow2.f32 %v728_v59  ;;  %v1071_v59 = vld [vmem:[#allocation2 + $0x4] sm:$0xf] }
 0x2b2   : > { %818 = vmatpush.bf16.msrb.mxu2 %v787_v36  ;;  %v1666_v27 = vpop.eup %1183  ;;  %1195 = vpow2.f32 %v730_v1 }
 0x2b3   : > { %v749_v18 = vadd.f32 %v1166_v8, %v748_v43  ;;  %v1670_v8 = vpop.eup %1185  ;;  %1197 = vpow2.f32 %v716_v2  ;;  %v789_v2 = vpack.c.bf16 %v1666_v27, %v1662_v0 }
 0x2b4   : > { %v1672_v28 = vpop.eup %1187  ;;  %1199 = vpow2.f32 %v718_v7  ;;  %v1073_v7 = vld [vmem:[#allocation2 + $0x14] sm:$0xf] }
 0x2b5   : > { %v750_v54 = vadd.f32 %v1180_v20, %v749_v18  ;;  %v1190_v5 = vpop.eup %1189  ;;  %v796_v25 = vpack.c.bf16 %v1672_v28, %v1670_v8  ;;  %1201 = vpow2.f32 %v724_v24  ;;  %v1057_v24 = vld [vmem:[#allocation2 + $0x18] sm:$0xf0] }
 0x2b6   : > { %819 = vmatpush.bf16.msrb.mxu2 %v786_v33  ;;  %v1192_v37 = vpop.eup %1191  ;;  %1203 = vpow2.f32 %v726_v34 }
 0x2b7   : > { %v751_v57 = vadd.f32 %v1172_v10, %v750_v54  ;;  %v784_v10 = vpack.c.bf16 %v1621_v3, %v1619_v53  ;;  %836 = vmatpush.bf16.msra.mxu3 %v796_v25 }
 0x2b9   : > { %v752_v62 = vadd.f32 %v1174_v14, %v751_v57  ;;  %v795_v14 = vpack.c.bf16 %v1192_v37, %v1190_v5 }
 0x2ba   : > { %820 = vmatpush.bf16.msrb.mxu2 %v785_v13  ;;  %v1056_v13 = vor.u32 %v1074_v42, %v1055_v16 }
 0x2bb   : > { %v753_v4 = vadd.f32 %v1168_v9, %v752_v62  ;;  %v667_v9 = vsub.f32 %v1482_v29, %v1564_v63  ;;  %v1194_v63 = vpop.eup %1193  ;;  %837 = vmatpush.bf16.msra.mxu3 %v795_v14 }
 0x2bc   : > { %v1196_v40 = vpop.eup %1195 }
 0x2bd   : > { %v754_v35 = vadd.f32 %v1170_v31, %v753_v4  ;;  %v720_v31 = vmul.f32 1.442695, %v666_v32  ;;  %v722_v29 = vmul.f32 1.442695, %v667_v9  ;;  %v1198_v53 = vpop.eup %1197  ;;  %v794_v23 = vpack.c.bf16 %v1196_v40, %v1194_v63 }
 0x2be   : > { %821 = vmatpush.bf16.msrb.mxu2 %v784_v10  ;;  %v1200_v22 = vpop.eup %1199  ;;  %v1052_v4 = vor.u32 %v1071_v59, %v1049_v44 }
 0x2bf   : > { %v755_v6 = vadd.f32 %v1662_v0, %v754_v35  ;;  %1205 = vpow2.f32 %v720_v31  ;;  %v1202_v43 = vpop.eup %1201  ;;  %838 = vmatpush.bf16.msra.mxu3 %v794_v23  ;;  %v791_v33 = vpack.c.bf16 %v1200_v22, %v1198_v53  ;;  %v1060_v35 = vor.u32 %v1073_v7, %v1057_v24 }
 0x2c0   : > { %1207 = vpow2.f32 %v722_v29  ;;  %v1204_v18 = vpop.eup %1203 }
 0x2c1   : > { %v756_v11 = vadd.f32 %v1666_v27, %v755_v6  ;;  %v793_v45 = vpack.c.bf16 %v1204_v18, %v1202_v43  ;;  %v861_v6 = vstv %s860_s23 }
 0x2c2   : > { %822 = vmatpush.bf16.msrb.mxu2 %v783_v15 }
 0x2c3   : > { %v757_v41 = vadd.f32 %v1639_v51, %v756_v11  ;;  %839 = vmatpush.bf16.msra.mxu3 %v793_v45 }
 0x2c5   : > { %v758_v3 = vadd.f32 %v1644_v17, %v757_v41  ;;  %v1206_v20 = vpop.eup %1205 }
 0x2c6   : > { %823 = vmatpush.bf16.msrb.mxu2 %v782_v26  ;;  %v1208_v54 = vpop.eup %1207 }
 0x2c7   : > { %v759_v60 = vadd.f32 %v1198_v53, %v758_v3  ;;  %v792_v57 = vpack.c.bf16 %v1208_v54, %v1206_v20 }
 0x2c9   : > { %v760_v36 = vadd.f32 %v1200_v22, %v759_v60  ;;  %840 = vmatpush.bf16.msra.mxu3 %v792_v57 }
 0x2ca   : > { %824 = vmatpush.bf16.msrb.mxu2 %v781_v21 }
 0x2cb   : > { %v761_v39 = vadd.f32 %v1206_v20, %v760_v36 }
 0x2cd   : > { %v762_v52 = vadd.f32 %v1208_v54, %v761_v39  ;;  %825 = vmatmul.bf16.vlgmr.msrb.gmra.mxu2 %v1048_v55  ;;  %841 = vmatpush.bf16.msra.mxu3 %v791_v33 }
 0x2cf   : > { %v763_v56 = vadd.f32 %v1202_v43, %v762_v52 }
 0x2d1   : > { %v764_v19 = vadd.f32 %v1204_v18, %v763_v56  ;;  %842 = vmatpush.bf16.msra.mxu3 %v790_v12 }
 0x2d3   : > { %v765_v30 = vadd.f32 %v1194_v63, %v764_v19 }
 0x2d5   : > { %v766_v49 = vadd.f32 %v1196_v40, %v765_v30  ;;  %843 = vmatpush.bf16.msra.mxu3 %v789_v2 }
 0x2d7   : > { %v767_v38 = vadd.f32 %v1190_v5, %v766_v49 }
 0x2d8   : > { %844 = vmatmul.bf16.vlgmr.msra.gmra.mxu3 %v1052_v4 }
 0x2d9   : > { %v768_v62 = vadd.f32 %v1192_v37, %v767_v38 }
 0x2db   : > { %v769_v1 = vadd.f32 %v1670_v8, %v768_v62 }
 0x2dd   : > { %v770_v32 = vadd.f32 %v1672_v28, %v769_v1  ;;  %830 = vmatmul.bf16.gmra.mxu2 %v1056_v13 }
 0x2df   : > { %v771_v51 = vrot.slane %v770_v32, 4 }
 0x2e1   : > { %v772_v17 = vadd.f32 %v771_v51, %v770_v32 }
 0x2e3   : > { %v773_v12 = vrot.slane %v772_v17, 2 }
 0x2e5   : > { %v774_v9 = vadd.f32 %v773_v12, %v772_v17 }
 0x2e7   : > { %v775_v8 = vrot.slane %v774_v9, 1 }
 0x2e8   : > { %849 = vmatmul.bf16.gmra.mxu3 %v1060_v35 }
 0x2e9   : > { %v776_v5 = vadd.f32 %v775_v8, %v774_v9 }
 0x2eb   : > { %1209 = vrcp.f32 %v776_v5 }
 0x2f1   : > { %v1210_v28 = vpop.eup %1209 }
 0x350   : > { %v826_v34 = vpop.f32.mrf.mxu2 }
 0x358   : > { %v828_v25 = vpop.f32.mrf.mxu2 }
 0x35b   : > { %v845_v0 = vpop.f32.mrf.mxu3 }
 0x35c   : > { %v846_v27 = vadd.f32 %v845_v0, %v826_v34 }
 0x35e   : > { %v856_v10 = vmul.f32 %v1210_v28, %v846_v27 }
 0x360   : > { %v862_v37 = vmul.f32 %v861_v6, %v856_v10  ;;  %v831_v41 = vpop.f32.mrf.mxu2 }
 0x362   : > { %v866_v31 = vadd.f32 %v862_v37, %v1428_v48 }
 0x363   : > { %v847_v11 = vpop.f32.mrf.mxu3 }
 0x364   : > { %870 = vst [vmem:[%s1388_s21] sm:$0xff] %v866_v31  ;;  %v848_v29 = vadd.f32 %v847_v11, %v828_v25 }
 0x366   : > { %v857_v63 = vmul.f32 %v1210_v28, %v848_v29 }
 0x368   : > { %v863_v14 = vmul.f32 %v861_v6, %v857_v63  ;;  %v833_v43 = vpop.f32.mrf.mxu2 }
 0x36a   : > { %v867_v15 = vadd.f32 %v863_v14, %v1432_v50 }
 0x36b   : > { %v850_v40 = vpop.f32.mrf.mxu3 }
 0x36c   : > { %871 = vst [vmem:[%s1388_s21 + $0x8] sm:$0xff] %v867_v15  ;;  %v851_v53 = vadd.f32 %v850_v40, %v831_v41 }
 0x36e   : > { %v858_v3 = vmul.f32 %v1210_v28, %v851_v53 }
 0x370   : > { %v864_v22 = vmul.f32 %v861_v6, %v858_v3 }
 0x372   : > { %v868_v60 = vadd.f32 %v864_v22, %v1424_v46  ;;  %v919_v46 = vld [vmem:[%s1388_s21] sm:$0xff] (%p1353_p5) }
 0x373   : > { %v852_v23 = vpop.f32.mrf.mxu3  ;;  %v921_v50 = vld [vmem:[%s1388_s21 + $0x8] sm:$0xff] (%p1353_p5)  ;;  %920 = vst [vmem:[%s884_s14] sm:$0xff] (%p1353_p5), %v919_v46 }
 0x374   : > { %872 = vst [vmem:[%s1388_s21 + $0x10] sm:$0xff] %v868_v60  ;;  %v853_v48 = vadd.f32 %v852_v23, %v833_v43 }
 0x375   : > { %922 = vst [vmem:[%s884_s14 + $0x10] sm:$0xff] (%p1353_p5), %v921_v50 }
 0x376   : > { %v859_v26 = vmul.f32 %v1210_v28, %v853_v48 }
 0x378   : > { %v865_v18 = vmul.f32 %v861_v6, %v859_v26  ;;  %880 = sbr.rel (!%p1353_p5) target bundleno = 901 (0x385), region = 52 }
 0x37a   : > { %v869_v36 = vadd.f32 %v865_v18, %v1426_v47 }
 0x37b   : > { %v923_v47 = vld [vmem:[%s1388_s21 + $0x10] sm:$0xff] (%p1353_p5) }
 0x37c   : > { %873 = vst [vmem:[%s1388_s21 + $0x18] sm:$0xff] %v869_v36 }
 0x37d   : > { %924 = vst [vmem:[%s884_s14 + $0x20] sm:$0xff] %v923_v47 }
 0x383   : > { %v925_v58 = vld [vmem:[%s1388_s21 + $0x18] sm:$0xff] }
 0x384   : > { %926 = vst [vmem:[%s884_s14 + $0x30] sm:$0xff] %v925_v58 }
 0x385 PF: > { %s17_s29 = sadd.s32 1, %s1265_s29   ;;  %s1745_s23 = smov %s1245_s24 }
 0x386   : > { %p14_p11 = scmp.ge.s32.totalorder %s17_s29, 6   ;;  %s1746_s24 = smov %s1364_s13 }
 0x387   : > { %s1747_s25 = smov %s1257_s27  ;;  %s1748_s26 = smov %s1261_s28 }
 0x388   : > { %s1749_s27 = smov %s1752_s0  ;;  %s1750_s28 = smov %s1756_s30 }
 0x389   :  { %16 = sbr.rel (!%p14_p11) target bundleno = 6 (0x6), region = 117 }

</bundles_post_ra>
